<compile_context>
chip_gen: v7x
topology: tpu7x:2x2x1
jax: 0.10.0
libtpu: 0.0.40
codegen_flags: <defaults>
</compile_context>

<pallas_src>
import numpy as np
import jax
import jax.numpy as jnp
from jax.experimental import pallas as pl
from jax.experimental.pallas import tpu as pltpu

OBJECTS = ['capsulemachine', 'box', 'ketchup', 'laptop', 'microwave', 'mixer',
           'notebook', 'espressomachine', 'waffleiron', 'scissors', 'phone']

ROW_TILE_MAX = 256        # rows (sublanes) per grid step; 7 f32 planes * 2 buf
                          # * 256 * 128 * 4B ~= 1.75 MiB -> fits every chip.


# ----------------------------------------------------------------------------
# glue: axis-angle -> quaternion (pytorch3d convention, w-first) and
#       quaternion -> rotation matrix (unit quaternions).  Tiny per-batch work.
# ----------------------------------------------------------------------------
def axis_angle_to_quaternion(aa):
    angles = jnp.linalg.norm(aa, axis=-1, keepdims=True)
    half = angles * 0.5
    small = jnp.abs(angles) < 1e-6
    safe = jnp.where(small, jnp.ones_like(angles), angles)
    sin_half_over = jnp.where(small, 0.5 - angles * angles / 48.0,
                              jnp.sin(half) / safe)
    return jnp.concatenate([jnp.cos(half), aa * sin_half_over], axis=-1)


def quaternion_to_matrix(q):
    """q: (B, 4) unit quaternion (w, x, y, z) -> (B, 3, 3)."""
    w, x, y, z = q[:, 0], q[:, 1], q[:, 2], q[:, 3]
    r00 = 1.0 - 2.0 * (y * y + z * z)
    r01 = 2.0 * (x * y - z * w)
    r02 = 2.0 * (x * z + y * w)
    r10 = 2.0 * (x * y + z * w)
    r11 = 1.0 - 2.0 * (x * x + z * z)
    r12 = 2.0 * (y * z - x * w)
    r20 = 2.0 * (x * z - y * w)
    r21 = 2.0 * (y * z + x * w)
    r22 = 1.0 - 2.0 * (x * x + y * y)
    m = jnp.stack([r00, r01, r02, r10, r11, r12, r20, r21, r22], axis=-1)
    return m.reshape(-1, 3, 3)


# ----------------------------------------------------------------------------
# Pallas kernel: mask-selected 3x3 rotation + translation on lane-dense tiles.
#   out = (Rbot @ p + t) + mask * (dR @ p),   dR = Rtop - Rbot
# Rotation coefficients are per-batch scalars read from SMEM (no XLU work).
# ----------------------------------------------------------------------------
def _rot_merge_kernel(obj_idx_ref, coef_ref, tpl_ref, out_ref):
    # obj_idx_ref: (B,) int32 SMEM (scalar prefetch; used only by index_maps)
    # coef_ref   : (B, 21) f32 SMEM: 0..8 Rbot row-major, 9..17 Rtop-Rbot,
    #                                 18..20 translation
    # tpl_ref    : (1, 4, TR, 128) VMEM  (planes x,y,z, top-mask)
    # out_ref    : (1, 3, TR, 128) VMEM
    del obj_idx_ref
    b = pl.program_id(0)

    px = tpl_ref[0, 0]
    py = tpl_ref[0, 1]
    pz = tpl_ref[0, 2]
    m = tpl_ref[0, 3]

    def c(j):
        return coef_ref[b, j]            # scalar SMEM read, free VPU broadcast

    bx = c(0) * px + c(1) * py + c(2) * pz + c(18)
    by = c(3) * px + c(4) * py + c(5) * pz + c(19)
    bz = c(6) * px + c(7) * py + c(8) * pz + c(20)
    dx = c(9) * px + c(10) * py + c(11) * pz
    dy = c(12) * px + c(13) * py + c(14) * pz
    dz = c(15) * px + c(16) * py + c(17) * pz

    out_ref[0, 0] = bx + m * dx
    out_ref[0, 1] = by + m * dy
    out_ref[0, 2] = bz + m * dz


def fused_rotate_merge(tpl, obj_idx, coef, row_tile):
    """tpl: (n_obj, 4, K, 128) f32 static templates (xyz + top-mask planes).
    obj_idx: (B,) int32, coef: (B, 21) f32.
    Returns (B, 3, K, 128) f32 transformed, lane-dense points."""
    _, _, K, _ = tpl.shape
    B = obj_idx.shape[0]
    n_row_blocks = K // row_tile

    return pl.pallas_call(
        _rot_merge_kernel,
        out_shape=jax.ShapeDtypeStruct((B, 3, K, 128), jnp.float32),
        grid_spec=pltpu.PrefetchScalarGridSpec(
            num_scalar_prefetch=1,                       # obj_idx
            grid=(B, n_row_blocks),
            in_specs=[
                # per-batch coefficients: whole table in SMEM, read as scalars
                pl.BlockSpec(memory_space=pltpu.MemorySpace.SMEM),
                # template blocks streamed directly from HBM, object chosen by
                # the scalar-prefetched obj_idx (no per-call XLA gather)
                pl.BlockSpec((1, 4, row_tile, 128),
                             lambda b, r, oid: (oid[b], 0, r, 0)),
            ],
            out_specs=pl.BlockSpec((1, 3, row_tile, 128),
                                   lambda b, r, oid: (b, 0, r, 0)),
        ),
        compiler_params=pltpu.CompilerParams(
            dimension_semantics=("parallel", "parallel")),
    )(obj_idx, coef, tpl)


# ----------------------------------------------------------------------------
# pure-JAX reference (quaternion form, mirrors the original torch semantics)
# ----------------------------------------------------------------------------
def _quaternion_apply_ref(q, p):        # q (B,4), p (B,N,3)
    w = q[:, None, 0:1]
    qv = q[:, None, 1:]
    c = jnp.cross(jnp.broadcast_to(qv, p.shape), p)
    u = c + w * p
    d = jnp.cross(jnp.broadcast_to(qv, u.shape), u)
    return p + 2.0 * d


def _rot_merge_ref(pts, mask_top, qa, qg, transl):
    top = _quaternion_apply_ref(qa, pts)
    top = _quaternion_apply_ref(qg, top) + transl[:, None, :]
    bot = _quaternion_apply_ref(qg, pts) + transl[:, None, :]
    m = mask_top[..., None]
    return m * top + (1.0 - m) * bot


# ----------------------------------------------------------------------------
# ObjectTensors in JAX (synthetic, deterministic templates)
# ----------------------------------------------------------------------------
# TODO(synk): object templates normally come from mesh.obj / *.json on disk;
#             here they are synthesized deterministically with the same layout.
class ObjectTensorsJax:
    def __init__(self, key, max_v=96, n_sub=32, n_bbox=8, n_kp=16, n_f=64):
        n_obj = len(OBJECTS)
        ks = jax.random.split(key, 12)
        self.names = OBJECTS
        self.max_v = max_v
        self.n_sub = n_sub
        self.n_bbox = n_bbox
        self.n_kp = n_kp

        v_len = jax.random.randint(ks[0], (n_obj,), 40, max_v + 1)
        f_len = jax.random.randint(ks[1], (n_obj,), 32, n_f + 1)
        arange_v = jnp.arange(max_v)[None, :]
        valid = arange_v < v_len[:, None]

        v = jax.random.normal(ks[2], (n_obj, max_v, 3)) * 100.0
        v = jnp.where(valid[..., None], v, 0.0)
        parts = jax.random.randint(ks[3], (n_obj, max_v), 0, 2) + 1
        parts = jnp.where(valid, parts, 0)

        v_sub = jax.random.normal(ks[4], (n_obj, n_sub, 3)) * 100.0
        parts_sub = jax.random.randint(ks[5], (n_obj, n_sub), 0, 2) + 1

        f = jax.random.randint(ks[6], (n_obj, n_f, 3), 0, max_v)
        diameter = jax.random.uniform(ks[7], (n_obj,), minval=0.1, maxval=0.5)

        bbox_top = jax.random.normal(ks[8], (n_obj, n_bbox, 3)) * 100.0
        bbox_bottom = jax.random.normal(ks[9], (n_obj, n_bbox, 3)) * 100.0
        kp_top = jax.random.normal(ks[10], (n_obj, n_kp, 3)) * 100.0
        kp_bottom = jax.random.normal(ks[11], (n_obj, n_kp, 3)) * 100.0

        mask = valid.astype(jnp.float32)

        self.t = {
            'parts_ids': parts.astype(jnp.int32),
            'parts_sub_ids': parts_sub.astype(jnp.int32),
            'v': v.astype(jnp.float32) / 1000.0,
            'v_sub': v_sub.astype(jnp.float32) / 1000.0,
            'v_len': v_len.astype(jnp.int32),
            'f': f.astype(jnp.int32),
            'f_len': f_len.astype(jnp.int32),
            'diameter': diameter.astype(jnp.float32),
            'mask': mask,
            'bbox_top': bbox_top.astype(jnp.float32) / 1000.0,
            'bbox_bottom': bbox_bottom.astype(jnp.float32) / 1000.0,
            'kp_top': kp_top.astype(jnp.float32) / 1000.0,
            'kp_bottom': kp_bottom.astype(jnp.float32) / 1000.0,
        }
        self.z_axis = jnp.array([[0.0, 0.0, -1.0]], dtype=jnp.float32)

        # -------- static per-object point/mask templates, lane-dense ---------
        self._build_point_templates()

        # single jitted device path (templates are closed-over constants)
        self._fwd = jax.jit(self._device_forward)

    def _build_point_templates(self):
        """Precompute (n_obj, 4, K, 128): planes 0..2 xyz, plane 3 top-mask."""
        t = self.t
        n_obj = len(self.names)
        nb, nk = self.n_bbox, self.n_kp

        pts = jnp.concatenate(
            [t['v'], t['v_sub'], t['bbox_top'], t['bbox_bottom'],
             t['kp_top'], t['kp_bottom']], axis=1)                 # (n_obj,N,3)
        mask = jnp.concatenate(
            [(t['parts_ids'] == 1).astype(jnp.float32),
             (t['parts_sub_ids'] == 1).astype(jnp.float32),
             jnp.ones((n_obj, nb), jnp.float32),
             jnp.zeros((n_obj, nb), jnp.float32),
             jnp.ones((n_obj, nk), jnp.float32),
             jnp.zeros((n_obj, nk), jnp.float32)], axis=1)         # (n_obj,N)

        N = pts.shape[1]
        k_raw = -(-N // 128)                   # rows of 128 lanes
        k8 = ((k_raw + 7) // 8) * 8            # sublane-align
        row_tile = min(k8, ROW_TILE_MAX)
        K = ((k8 + row_tile - 1) // row_tile) * row_tile
        npad = K * 128

        pts_p = jnp.pad(pts, ((0, 0), (0, npad - N), (0, 0)))
        mask_p = jnp.pad(mask, ((0, 0), (0, npad - N)))
        xyz = jnp.transpose(pts_p, (0, 2, 1)).reshape(n_obj, 3, K, 128)
        m = mask_p.reshape(n_obj, 1, K, 128)

        self.tpl = jnp.concatenate([xyz, m], axis=1)   # (n_obj, 4, K, 128)
        self.row_tile = int(row_tile)
        self.n_rows = int(K)
        self.n_points = int(N)

    # everything inside here is traced once; all shapes are static
    def _device_forward(self, obj_idx, angles, global_orient, transl_eff):
        t = self.t
        out = {}
        out['diameter'] = t['diameter'][obj_idx]
        out['f'] = t['f'][obj_idx]
        out['f_len'] = t['f_len'][obj_idx]
        out['v_len'] = t['v_len'][obj_idx]
        # NOTE: static max_v width instead of data-dependent max(v_len):
        # no device->host sync, no per-max_len retrace; padded rows carry
        # mask==0 / parts_ids==0 exactly like the torch padding.
        out['mask'] = t['mask'][obj_idx]
        out['parts_ids'] = t['parts_ids'][obj_idx]
        out['parts_sub_ids'] = t['parts_sub_ids'][obj_idx]

        B = angles.shape[0]
        quat_arti = axis_angle_to_quaternion(self.z_axis * angles)          # (B,4)
        quat_global = axis_angle_to_quaternion(global_orient.reshape(-1, 3))

        # per-batch rotation matrices (negligible work, plain JAX)
        r_g = quaternion_to_matrix(quat_global)      # R_bot
        r_a = quaternion_to_matrix(quat_arti)
        r_top = jnp.einsum('bij,bjk->bik', r_g, r_a)
        d_r = r_top - r_g
        coef = jnp.concatenate(
            [r_g.reshape(B, 9), d_r.reshape(B, 9), transl_eff], axis=-1)  # (B,21)

        # one pallas_call over all point sets; templates streamed by obj_idx
        res = fused_rotate_merge(self.tpl, obj_idx, coef, self.row_tile)
        res = res.reshape(B, 3, self.n_rows * 128)[:, :, :self.n_points]
        res = jnp.transpose(res, (0, 2, 1))          # back to (B, N, 3) contract

        s0 = self.max_v
        s1 = s0 + self.n_sub
        s2 = s1 + 2 * self.n_bbox
        s3 = s2 + 2 * self.n_kp
        out['v'] = res[:, :s0]
        out['v_sub'] = res[:, s0:s1]
        out['bbox3d'] = res[:, s1:s2]
        out['kp3d'] = res[:, s2:s3]
        return out

    def forward(self, angles, global_orient, transl, query_names):
        B = angles.shape[0]
        assert angles.shape == (B, 1)
        assert global_orient.shape == (B, 3)
        assert len(query_names) == B
        obj_idx = jnp.array([self.names.index(n) for n in query_names],
                            dtype=jnp.int32)
        transl_eff = (jnp.zeros((B, 3), jnp.float32) if transl is None
                      else transl.astype(jnp.float32))
        return self._fwd(obj_idx, angles.astype(jnp.float32),
                         global_orient.astype(jnp.float32), transl_eff)


if __name__ == "__main__":
    key = jax.random.PRNGKey(0)
    k_tpl, k_ang, k_rot, k_tr = jax.random.split(key, 4)

    model = ObjectTensorsJax(k_tpl)

    B = 4
    query_names = ['box', 'laptop', 'phone', 'mixer']
    angles = jax.random.uniform(k_ang, (B, 1), minval=0.1, maxval=1.5)
    global_orient = jax.random.normal(k_rot, (B, 3)) * 0.5
    transl = jax.random.normal(k_tr, (B, 3)) * 0.1

    out = model.forward(angles, global_orient, transl, query_names)
    jax.block_until_ready(out['v'])
    jax.block_until_ready(out['kp3d'])

    # ---- verify fused kernel against the pure-JAX quaternion reference ----
    t = model.t
    obj_idx = np.array([model.names.index(n) for n in query_names])
    pts_ref = jnp.concatenate(
        [t['v'][obj_idx], t['v_sub'][obj_idx],
         t['bbox_top'][obj_idx], t['bbox_bottom'][obj_idx],
         t['kp_top'][obj_idx], t['kp_bottom'][obj_idx]], axis=1)
    nb, nk = model.n_bbox, model.n_kp
    mask_ref = jnp.concatenate(
        [(t['parts_ids'][obj_idx] == 1).astype(jnp.float32),
         (t['parts_sub_ids'][obj_idx] == 1).astype(jnp.float32),
         jnp.ones((B, nb), jnp.float32), jnp.zeros((B, nb), jnp.float32),
         jnp.ones((B, nk), jnp.float32), jnp.zeros((B, nk), jnp.float32)],
        axis=1)
    qa = axis_angle_to_quaternion(model.z_axis * angles)
    qg = axis_angle_to_quaternion(global_orient.reshape(-1, 3))
    ref_all = _rot_merge_ref(pts_ref, mask_ref, qa, qg,
                             transl.astype(jnp.float32))

    s0 = model.max_v
    s1 = s0 + model.n_sub
    s2 = s1 + 2 * nb
    s3 = s2 + 2 * nk
    assert np.allclose(np.asarray(out['v']), np.asarray(ref_all[:, :s0]), atol=1e-5)
    assert np.allclose(np.asarray(out['v_sub']), np.asarray(ref_all[:, s0:s1]), atol=1e-5)
    assert np.allclose(np.asarray(out['bbox3d']), np.asarray(ref_all[:, s1:s2]), atol=1e-5)
    assert np.allclose(np.asarray(out['kp3d']), np.asarray(ref_all[:, s2:s3]), atol=1e-5)

    print("KERNEL_OK")
</pallas_src>

<mosaic_0001>
module attributes {stable_mosaic.version = 11 : i64} {
  func.func @_rot_merge_kernel(%arg0: i32, %arg1: i32, %arg2: memref<4xi32, #tpu.memory_space<smem>>, %arg3: memref<4x21xf32, #tpu.memory_space<smem>>, %arg4: memref<1x4x8x128xf32, #tpu.memory_space<vmem>>, %arg5: memref<1x3x8x128xf32, #tpu.memory_space<vmem>>) attributes {dimension_semantics = [#tpu.dimension_semantics<parallel>, #tpu.dimension_semantics<parallel>], iteration_bounds = array<i64: 4, 1>, scalar_prefetch = 1 : i64, scratch_operands = 0 : i64, tpu.core_type = #tpu.core_type<tc>, window_params = [{transform_indices = @transform_0, window_bounds = array<i64: 4, 21>}, {transform_indices = @transform_1, window_bounds = array<i64: 1, 4, 8, 128>}, {transform_indices = @transform_2, window_bounds = array<i64: 1, 3, 8, 128>}]} {
    %c0 = arith.constant 0 : index
    %c0_0 = arith.constant 0 : index
    %c0_1 = arith.constant 0 : index
    %c0_2 = arith.constant 0 : index
    %0 = vector.load %arg4[%c0, %c0_0, %c0_1, %c0_2] : memref<1x4x8x128xf32, #tpu.memory_space<vmem>>, vector<1x1x8x128xf32>
    %1 = vector.shape_cast %0 : vector<1x1x8x128xf32> to vector<8x128xf32>
    %c0_3 = arith.constant 0 : index
    %c1 = arith.constant 1 : index
    %c0_4 = arith.constant 0 : index
    %c0_5 = arith.constant 0 : index
    %2 = vector.load %arg4[%c0_3, %c1, %c0_4, %c0_5] : memref<1x4x8x128xf32, #tpu.memory_space<vmem>>, vector<1x1x8x128xf32>
    %3 = vector.shape_cast %2 : vector<1x1x8x128xf32> to vector<8x128xf32>
    %c0_6 = arith.constant 0 : index
    %c2 = arith.constant 2 : index
    %c0_7 = arith.constant 0 : index
    %c0_8 = arith.constant 0 : index
    %4 = vector.load %arg4[%c0_6, %c2, %c0_7, %c0_8] : memref<1x4x8x128xf32, #tpu.memory_space<vmem>>, vector<1x1x8x128xf32>
    %5 = vector.shape_cast %4 : vector<1x1x8x128xf32> to vector<8x128xf32>
    %c0_9 = arith.constant 0 : index
    %c3 = arith.constant 3 : index
    %c0_10 = arith.constant 0 : index
    %c0_11 = arith.constant 0 : index
    %6 = vector.load %arg4[%c0_9, %c3, %c0_10, %c0_11] : memref<1x4x8x128xf32, #tpu.memory_space<vmem>>, vector<1x1x8x128xf32>
    %7 = vector.shape_cast %6 : vector<1x1x8x128xf32> to vector<8x128xf32>
    %8 = arith.index_cast %arg0 : i32 to index
    %c0_12 = arith.constant 0 : index
    %9 = memref.load %arg3[%8, %c0_12] : memref<4x21xf32, #tpu.memory_space<smem>>
    %10 = vector.broadcast %9 : f32 to vector<8x128xf32>
    %11 = arith.mulf %10, %1 : vector<8x128xf32>
    %12 = arith.index_cast %arg0 : i32 to index
    %c1_13 = arith.constant 1 : index
    %13 = memref.load %arg3[%12, %c1_13] : memref<4x21xf32, #tpu.memory_space<smem>>
    %14 = vector.broadcast %13 : f32 to vector<8x128xf32>
    %15 = arith.mulf %14, %3 : vector<8x128xf32>
    %16 = arith.addf %11, %15 : vector<8x128xf32>
    %17 = arith.index_cast %arg0 : i32 to index
    %c2_14 = arith.constant 2 : index
    %18 = memref.load %arg3[%17, %c2_14] : memref<4x21xf32, #tpu.memory_space<smem>>
    %19 = vector.broadcast %18 : f32 to vector<8x128xf32>
    %20 = arith.mulf %19, %5 : vector<8x128xf32>
    %21 = arith.addf %16, %20 : vector<8x128xf32>
    %22 = arith.index_cast %arg0 : i32 to index
    %c18 = arith.constant 18 : index
    %23 = memref.load %arg3[%22, %c18] : memref<4x21xf32, #tpu.memory_space<smem>>
    %24 = vector.broadcast %23 : f32 to vector<8x128xf32>
    %25 = arith.addf %21, %24 : vector<8x128xf32>
    %26 = arith.index_cast %arg0 : i32 to index
    %c3_15 = arith.constant 3 : index
    %27 = memref.load %arg3[%26, %c3_15] : memref<4x21xf32, #tpu.memory_space<smem>>
    %28 = vector.broadcast %27 : f32 to vector<8x128xf32>
    %29 = arith.mulf %28, %1 : vector<8x128xf32>
    %30 = arith.index_cast %arg0 : i32 to index
    %c4 = arith.constant 4 : index
    %31 = memref.load %arg3[%30, %c4] : memref<4x21xf32, #tpu.memory_space<smem>>
    %32 = vector.broadcast %31 : f32 to vector<8x128xf32>
    %33 = arith.mulf %32, %3 : vector<8x128xf32>
    %34 = arith.addf %29, %33 : vector<8x128xf32>
    %35 = arith.index_cast %arg0 : i32 to index
    %c5 = arith.constant 5 : index
    %36 = memref.load %arg3[%35, %c5] : memref<4x21xf32, #tpu.memory_space<smem>>
    %37 = vector.broadcast %36 : f32 to vector<8x128xf32>
    %38 = arith.mulf %37, %5 : vector<8x128xf32>
    %39 = arith.addf %34, %38 : vector<8x128xf32>
    %40 = arith.index_cast %arg0 : i32 to index
    %c19 = arith.constant 19 : index
    %41 = memref.load %arg3[%40, %c19] : memref<4x21xf32, #tpu.memory_space<smem>>
    %42 = vector.broadcast %41 : f32 to vector<8x128xf32>
    %43 = arith.addf %39, %42 : vector<8x128xf32>
    %44 = arith.index_cast %arg0 : i32 to index
    %c6 = arith.constant 6 : index
    %45 = memref.load %arg3[%44, %c6] : memref<4x21xf32, #tpu.memory_space<smem>>
    %46 = vector.broadcast %45 : f32 to vector<8x128xf32>
    %47 = arith.mulf %46, %1 : vector<8x128xf32>
    %48 = arith.index_cast %arg0 : i32 to index
    %c7 = arith.constant 7 : index
    %49 = memref.load %arg3[%48, %c7] : memref<4x21xf32, #tpu.memory_space<smem>>
    %50 = vector.broadcast %49 : f32 to vector<8x128xf32>
    %51 = arith.mulf %50, %3 : vector<8x128xf32>
    %52 = arith.addf %47, %51 : vector<8x128xf32>
    %53 = arith.index_cast %arg0 : i32 to index
    %c8 = arith.constant 8 : index
    %54 = memref.load %arg3[%53, %c8] : memref<4x21xf32, #tpu.memory_space<smem>>
    %55 = vector.broadcast %54 : f32 to vector<8x128xf32>
    %56 = arith.mulf %55, %5 : vector<8x128xf32>
    %57 = arith.addf %52, %56 : vector<8x128xf32>
    %58 = arith.index_cast %arg0 : i32 to index
    %c20 = arith.constant 20 : index
    %59 = memref.load %arg3[%58, %c20] : memref<4x21xf32, #tpu.memory_space<smem>>
    %60 = vector.broadcast %59 : f32 to vector<8x128xf32>
    %61 = arith.addf %57, %60 : vector<8x128xf32>
    %62 = arith.index_cast %arg0 : i32 to index
    %c9 = arith.constant 9 : index
    %63 = memref.load %arg3[%62, %c9] : memref<4x21xf32, #tpu.memory_space<smem>>
    %64 = vector.broadcast %63 : f32 to vector<8x128xf32>
    %65 = arith.mulf %64, %1 : vector<8x128xf32>
    %66 = arith.index_cast %arg0 : i32 to index
    %c10 = arith.constant 10 : index
    %67 = memref.load %arg3[%66, %c10] : memref<4x21xf32, #tpu.memory_space<smem>>
    %68 = vector.broadcast %67 : f32 to vector<8x128xf32>
    %69 = arith.mulf %68, %3 : vector<8x128xf32>
    %70 = arith.addf %65, %69 : vector<8x128xf32>
    %71 = arith.index_cast %arg0 : i32 to index
    %c11 = arith.constant 11 : index
    %72 = memref.load %arg3[%71, %c11] : memref<4x21xf32, #tpu.memory_space<smem>>
    %73 = vector.broadcast %72 : f32 to vector<8x128xf32>
    %74 = arith.mulf %73, %5 : vector<8x128xf32>
    %75 = arith.addf %70, %74 : vector<8x128xf32>
    %76 = arith.index_cast %arg0 : i32 to index
    %c12 = arith.constant 12 : index
    %77 = memref.load %arg3[%76, %c12] : memref<4x21xf32, #tpu.memory_space<smem>>
    %78 = vector.broadcast %77 : f32 to vector<8x128xf32>
    %79 = arith.mulf %78, %1 : vector<8x128xf32>
    %80 = arith.index_cast %arg0 : i32 to index
    %c13 = arith.constant 13 : index
    %81 = memref.load %arg3[%80, %c13] : memref<4x21xf32, #tpu.memory_space<smem>>
    %82 = vector.broadcast %81 : f32 to vector<8x128xf32>
    %83 = arith.mulf %82, %3 : vector<8x128xf32>
    %84 = arith.addf %79, %83 : vector<8x128xf32>
    %85 = arith.index_cast %arg0 : i32 to index
    %c14 = arith.constant 14 : index
    %86 = memref.load %arg3[%85, %c14] : memref<4x21xf32, #tpu.memory_space<smem>>
    %87 = vector.broadcast %86 : f32 to vector<8x128xf32>
    %88 = arith.mulf %87, %5 : vector<8x128xf32>
    %89 = arith.addf %84, %88 : vector<8x128xf32>
    %90 = arith.index_cast %arg0 : i32 to index
    %c15 = arith.constant 15 : index
    %91 = memref.load %arg3[%90, %c15] : memref<4x21xf32, #tpu.memory_space<smem>>
    %92 = vector.broadcast %91 : f32 to vector<8x128xf32>
    %93 = arith.mulf %92, %1 : vector<8x128xf32>
    %94 = arith.index_cast %arg0 : i32 to index
    %c16 = arith.constant 16 : index
    %95 = memref.load %arg3[%94, %c16] : memref<4x21xf32, #tpu.memory_space<smem>>
    %96 = vector.broadcast %95 : f32 to vector<8x128xf32>
    %97 = arith.mulf %96, %3 : vector<8x128xf32>
    %98 = arith.addf %93, %97 : vector<8x128xf32>
    %99 = arith.index_cast %arg0 : i32 to index
    %c17 = arith.constant 17 : index
    %100 = memref.load %arg3[%99, %c17] : memref<4x21xf32, #tpu.memory_space<smem>>
    %101 = vector.broadcast %100 : f32 to vector<8x128xf32>
    %102 = arith.mulf %101, %5 : vector<8x128xf32>
    %103 = arith.addf %98, %102 : vector<8x128xf32>
    %104 = arith.mulf %7, %75 : vector<8x128xf32>
    %105 = arith.addf %25, %104 : vector<8x128xf32>
    %c0_16 = arith.constant 0 : index
    %c0_17 = arith.constant 0 : index
    %c0_18 = arith.constant 0 : index
    %c0_19 = arith.constant 0 : index
    %106 = vector.load %arg5[%c0_16, %c0_17, %c0_18, %c0_19] : memref<1x3x8x128xf32, #tpu.memory_space<vmem>>, vector<1x1x8x128xf32>
    %107 = vector.shape_cast %106 : vector<1x1x8x128xf32> to vector<8x128xf32>
    %108 = vector.shape_cast %105 : vector<8x128xf32> to vector<1x1x8x128xf32>
    tpu.vector_store %arg5[%c0_16, %c0_17, %c0_18, %c0_19], %108 {strides = array<i32>} : memref<1x3x8x128xf32, #tpu.memory_space<vmem>>, vector<1x1x8x128xf32>,
    %109 = arith.mulf %7, %89 : vector<8x128xf32>
    %110 = arith.addf %43, %109 : vector<8x128xf32>
    %c0_20 = arith.constant 0 : index
    %c1_21 = arith.constant 1 : index
    %c0_22 = arith.constant 0 : index
    %c0_23 = arith.constant 0 : index
    %111 = vector.load %arg5[%c0_20, %c1_21, %c0_22, %c0_23] : memref<1x3x8x128xf32, #tpu.memory_space<vmem>>, vector<1x1x8x128xf32>
    %112 = vector.shape_cast %111 : vector<1x1x8x128xf32> to vector<8x128xf32>
    %113 = vector.shape_cast %110 : vector<8x128xf32> to vector<1x1x8x128xf32>
    tpu.vector_store %arg5[%c0_20, %c1_21, %c0_22, %c0_23], %113 {strides = array<i32>} : memref<1x3x8x128xf32, #tpu.memory_space<vmem>>, vector<1x1x8x128xf32>,
    %114 = arith.mulf %7, %103 : vector<8x128xf32>
    %115 = arith.addf %61, %114 : vector<8x128xf32>
    %c0_24 = arith.constant 0 : index
    %c2_25 = arith.constant 2 : index
    %c0_26 = arith.constant 0 : index
    %c0_27 = arith.constant 0 : index
    %116 = vector.load %arg5[%c0_24, %c2_25, %c0_26, %c0_27] : memref<1x3x8x128xf32, #tpu.memory_space<vmem>>, vector<1x1x8x128xf32>
    %117 = vector.shape_cast %116 : vector<1x1x8x128xf32> to vector<8x128xf32>
    %118 = vector.shape_cast %115 : vector<8x128xf32> to vector<1x1x8x128xf32>
    tpu.vector_store %arg5[%c0_24, %c2_25, %c0_26, %c0_27], %118 {strides = array<i32>} : memref<1x3x8x128xf32, #tpu.memory_space<vmem>>, vector<1x1x8x128xf32>,
    return
  }
  func.func @transform_0(%arg0: i32, %arg1: i32, %arg2: memref<4xi32, #tpu.memory_space<smem>>) -> (i32, i32) {
    %c0_i32 = arith.constant 0 : i32
    %c0_i32_0 = arith.constant 0 : i32
    %c0_i32_1 = arith.constant 0 : i32
    return %c0_i32, %c0_i32_0 : i32, i32
  }
  func.func @transform_1(%arg0: i32, %arg1: i32, %arg2: memref<4xi32, #tpu.memory_space<smem>>) -> (i32, i32, i32, i32) {
    %0 = arith.index_cast %arg0 : i32 to index
    %1 = memref.load %arg2[%0] : memref<4xi32, #tpu.memory_space<smem>>
    %c0_i32 = arith.constant 0 : i32
    %c0_i32_0 = arith.constant 0 : i32
    %c0_i32_1 = arith.constant 0 : i32
    return %1, %c0_i32, %arg1, %c0_i32_0 : i32, i32, i32, i32
  }
  func.func @transform_2(%arg0: i32, %arg1: i32, %arg2: memref<4xi32, #tpu.memory_space<smem>>) -> (i32, i32, i32, i32) {
    %c0_i32 = arith.constant 0 : i32
    %c0_i32_0 = arith.constant 0 : i32
    %c0_i32_1 = arith.constant 0 : i32
    return %arg0, %c0_i32, %arg1, %c0_i32_0 : i32, i32, i32, i32
  }
}

</mosaic_0001>

<bundles_post_ra>
// kernel: _device_forward.1
= control target key start
LH: loop header
LB: loop body
LE: loop exit
PB: predicated region body
PF: predicated region fallthrough
CT: control target
= control target key end

     0   :  { %s694_s0 = inlined_call_operand.vmem [shape: s32[4], index: 0, kind: input, shape index: {}]   ;;  %s695_s1 = inlined_call_operand.vmem [shape: f32[4,21], index: 1, kind: input, shape index: {}]   ;;  %s696_s2 = inlined_call_operand.vmem [shape: f32[11,4,8,128], index: 2, kind: input, shape index: {}]   ;;  %s697_s3 = inlined_call_operand.vmem [shape: f32[4,3,8,128], index: 3, kind: output, shape index: {}]  }
   0x1   :  { %s8_s14 = sshll.u32 %s694_s0, 4  ;;  %s9_s14 = int_to_ptr.vmem [resolvable:$true] %s8_s14 }
   0x2   :  { %s469_s15 = scalar_lea.vmem %s9_s14, 16  ;;  %p474_p1 = scmp.lt.s32.totalorder %s9_s14, %s9_s14 }
   0x3   :  { %p470_p0 = scmp.ne.s32.totalorder %s9_s14, %s469_s15  ;;  %p475_p2 = scmp.lt.s32.totalorder %s469_s15, %s469_s15 }
   0x5   :  { %p476_p3 = por %p475_p2, %p474_p1 }
   0x7   :  { %p477_p4 = pnand %p476_p3, %p470_p0 }
   0x9   :  { %480 = shalt.err (!%p477_p4)  }
   0xa   :  { %s526_s16 = smov [#allocation3]  }
   0xb   :  { %11 = dma.vmem_to_smem %s9_s14, 16, %s526_s16, [#allocation2] }
   0xc   :  { %508 = dma.done.wait [#allocation2], 16 }
   0xd   :  { %509 = vsyncadd [#allocation2], 4294967280 }
   0xe   :  { %13 = sfence }
   0xf   :  { %14 = vsyncpa [#allocation5], 0  ;;  %s551_s17 = smov 0   ;;  %s553_s18 = smov 0  }
  0x10   :  { %s555_s19 = smov 0  }
  0x11 LB: > { %s413_s0 = sadd.s32 4294967295, %s524_s19   ;;  %s32_s20 = sadd.s32 1, %s520_s18  ;;  %s524_s19 = sphi %s555_s19, %s20_s19   ;;  %s520_s18 = sphi %s553_s18, %s701_s18   ;;  %s516_s17 = sphi %s551_s17, %s700_s17  }
  0x12   : > { %p34_p5 = scmp.ge.s32.totalorder %s32_s20, 4  ;;  %p415_p6 = scmp.ge.s32.totalorder %s524_s19, 1 }
  0x13   : > { %p116_p7 = scmp.lt.s32.totalorder %s524_s19, 5  ;;  %p576_p9 = scmp.eq.s32.totalorder %s413_s0, 0 }
  0x14   : > { %s703_s20 = smov (%p34_p5, %s32_s20), 0  ;;  %s129_s25 = sshll.u32 %s695_s1, 4  ;;  %s130_s25 = int_to_ptr.vmem [resolvable:$true] %s129_s25 }
  0x15   : > { %p572_p8 = pnand %p415_p6, %p116_p7  ;;  %s481_s26 = scalar_lea.vmem %s130_s25, 64 }
  0x16   : > { %p482_p12 = scmp.ne.s32.totalorder %s130_s25, %s481_s26  ;;  %p489_p2 = scmp.lt.s32.totalorder %s130_s25, %s130_s25 }
  0x17   : > { %p437_p10 = pneg %p572_p8  ;;  %p490_p3 = scmp.lt.s32.totalorder %s481_s26, %s481_s26 }
  0x19   : > { %p438_p11 = pnand %p576_p9, %p437_p10  ;;  %p491_p4 = por %p490_p3, %p489_p2 }
  0x1b   : > { %p483_p13 = pneg %p438_p11 }
  0x1d   : > { %p484_p0 = pnand %p483_p13, %p482_p12 }
  0x1f   : > { %p485_p1 = pneg %p484_p0 }
  0x21   : > { %p492_p5 = pnand %p491_p4, %p485_p1 }
  0x23   : > { %495 = shalt.err (!%p492_p5)
}
  0x24   : > { %s527_s27 = smov [#allocation4]   ;;  %155 = sbr.rel (%p572_p8) target bundleno = 89 (0x59), region = 28 }
  0x25   : > { %440 = dma.vmem_to_smem (!%p438_p11), %s130_s25, 64, %s527_s27, [#allocation5]  }
  0x2b   : > { %511 = dma.done.wait (%p576_p9), [#allocation5], 64  }
  0x2c   : > { %513 = vsyncadd (%p576_p9), [#allocation5], 4294967232 }
  0x2d   : > { %161 = sfence }
  0x2e   : > { %s185_s28 = sld [smem:[#allocation3 + %s516_s17]]  ;;  %p195_p6 = scmp.lt.s32.totalorder %s516_s17, 3 }
  0x2f   : > { %s596_s29 = sshll.u32 %s516_s17, 7 }
  0x30   : > { %s705_s17 = smov (!%p195_p6, %s516_s17), 3  ;;  %s211_s30 = sld [smem:[#allocation4 + %s596_s29]] }
  0x31   : > { %s214_s4 = sadd.s32 1, %s596_s29  ;;  %s432_s5 = smul.u32 24, %s705_s17 }
  0x32   : > { %s215_s6 = sld [smem:[#allocation4 + %s214_s4]]  ;;  %s219_s7 = sadd.s32 2, %s596_s29 }
  0x33   : > { %s224_s8 = sadd.s32 18, %s596_s29  ;;  %s606_s11 = scalar_lea.vmem %s697_s3, %s432_s5 }
  0x34   : > { %p186_p7 = scmp.lt.s32.totalorder %s185_s28, 10  ;;  %s220_s12 = sld [smem:[#allocation4 + %s219_s7]] }
  0x35   : > { %s608_s13 = sld [smem:[#allocation4 + %s224_s8]]  ;;  %s264_s14 = sadd.s32 9, %s596_s29 }
  0x36   : > { %s707_s28 = smov (!%p186_p7, %s185_s28), 10  ;;  %s268_s15 = sadd.s32 10, %s596_s29  ;;  %v212_v0 = vstv %s211_s30 }
  0x37   : > { %s431_s16 = sshll.u32 %s707_s28, 5  ;;  %s265_s17 = sld [smem:[#allocation4 + %s264_s14]] }
  0x38   : > { %v216_v1 = vstv %s215_s6  ;;  %s615_s22 = scalar_lea.vmem %s696_s2, %s431_s16  ;;  %s269_s23 = sld [smem:[#allocation4 + %s268_s15]] }
  0x39   : > { %v618_v2 = vld [vmem:[%s615_s22] sm:$0xff]  ;;  %v621_v3 = vld [vmem:[%s615_s22 + $0x8] sm:$0xff]  ;;  %v624_v4 = vld [vmem:[%s615_s22 + $0x10] sm:$0xff]  ;;  %s273_s24 = sadd.s32 11, %s596_s29  ;;  %s228_s25 = sadd.s32 3, %s596_s29 }
  0x3a   : > { %v213_v5 = vmul.f32 %v212_v0, %v618_v2  ;;  %v217_v6 = vmul.f32 %v621_v3, %v216_v1  ;;  %v221_v7 = vstv %s220_s12  ;;  %s274_s26 = sld [smem:[#allocation4 + %s273_s24]]  ;;  %s232_s28 = sadd.s32 4, %s596_s29  ;;  %v425_v21 = vld [vmem:[%s615_s22 + $0x18] sm:$0xff] }
  0x3b   : > { %s229_s27 = sld [smem:[#allocation4 + %s228_s25]]  ;;  %v222_v8 = vmul.f32 %v624_v4, %v221_v7  ;;  %s237_s30 = sadd.s32 5, %s596_s29  ;;  %v226_v15 = vstv %s608_s13 }
  0x3c   : > { %v218_v9 = vadd.f32 %v217_v6, %v213_v5  ;;  %s233_s4 = sld [smem:[#allocation4 + %s232_s28]]  ;;  %s242_s6 = sadd.s32 19, %s596_s29 }
  0x3d   : > { %s238_s5 = sld [smem:[#allocation4 + %s237_s30]]  ;;  %v266_v10 = vstv %s265_s17  ;;  %s278_s7 = sadd.s32 12, %s596_s29 }
  0x3e   : > { %v267_v11 = vmul.f32 %v266_v10, %v618_v2  ;;  %v270_v12 = vstv %s269_s23  ;;  %s636_s8 = sld [smem:[#allocation4 + %s242_s6]]  ;;  %v223_v13 = vadd.f32 %v222_v8, %v218_v9  ;;  %s282_s10 = sadd.s32 13, %s596_s29 }
  0x3f   : > { %s638_s9 = sld [smem:[#allocation4 + %s278_s7]]  ;;  %v271_v14 = vmul.f32 %v621_v3, %v270_v12  ;;  %s287_s12 = sadd.s32 14, %s596_s29 }
  0x40   : > { %v275_v16 = vstv %s274_s26  ;;  %s644_s14 = sld [smem:[#allocation4 + %s282_s10]]  ;;  %s246_s16 = sadd.s32 6, %s596_s29  ;;  %v227_v24 = vadd.f32 %v226_v15, %v223_v13 }
  0x41   : > { %v230_v17 = vstv %s229_s27  ;;  %s646_s15 = sld [smem:[#allocation4 + %s287_s12]]  ;;  %v272_v18 = vadd.f32 %v271_v14, %v267_v11  ;;  %v276_v19 = vmul.f32 %v624_v4, %v275_v16  ;;  %s250_s17 = sadd.s32 7, %s596_s29 }
  0x42   : > { %v231_v20 = vmul.f32 %v230_v17, %v618_v2  ;;  %v234_v22 = vstv %s233_s4  ;;  %s653_s13 = sld [smem:[#allocation4 + %s246_s16]]  ;;  %s255_s21 = sadd.s32 8, %s596_s29 }
  0x43   : > { %v239_v23 = vstv %s238_s5  ;;  %s655_s0 = sld [smem:[#allocation4 + %s250_s17]]  ;;  %v277_v25 = vadd.f32 %v276_v19, %v272_v18  ;;  %v235_v26 = vmul.f32 %v621_v3, %v234_v22  ;;  %s260_s23 = sadd.s32 20, %s596_s29 }
  0x44   : > { %v240_v27 = vmul.f32 %v624_v4, %v239_v23  ;;  %s256_s22 = sld [smem:[#allocation4 + %s255_s21]]  ;;  %s292_s25 = sadd.s32 15, %s596_s29  ;;  %v244_v38 = vstv %s636_s8 }
  0x45   : > { %v280_v28 = vstv %s638_s9  ;;  %s662_s24 = sld [smem:[#allocation4 + %s260_s23]]  ;;  %v306_v29 = vmul.f32 %v425_v21, %v277_v25  ;;  %v236_v30 = vadd.f32 %v235_v26, %v231_v20  ;;  %s296_s26 = sadd.s32 16, %s596_s29 }
  0x46   : > { %v281_v31 = vmul.f32 %v280_v28, %v618_v2  ;;  %v284_v32 = vstv %s644_s14  ;;  %s293_s27 = sld [smem:[#allocation4 + %s292_s25]]  ;;  %s301_s30 = sadd.s32 17, %s596_s29 }
  0x47   : > { %v289_v33 = vstv %s646_s15  ;;  %s297_s28 = sld [smem:[#allocation4 + %s296_s26]]  ;;  %v307_v34 = vadd.f32 %v306_v29, %v227_v24  ;;  %v241_v35 = vadd.f32 %v240_v27, %v236_v30  ;;  %v285_v36 = vmul.f32 %v621_v3, %v284_v32 }
  0x48   : > { %v290_v37 = vmul.f32 %v624_v4, %v289_v33  ;;  %v248_v39 = vstv %s653_s13  ;;  %s302_s4 = sld [smem:[#allocation4 + %s301_s30]] }
  0x49   : > { %v252_v40 = vstv %s655_s0  ;;  %308 = vst [vmem:[%s606_s11] sm:$0xff] %v307_v34  ;;  %v286_v41 = vadd.f32 %v285_v36, %v281_v31  ;;  %v249_v42 = vmul.f32 %v248_v39, %v618_v2  ;;  %v245_v45 = vadd.f32 %v244_v38, %v241_v35 }
  0x4a   : > { %v253_v43 = vmul.f32 %v621_v3, %v252_v40  ;;  %v257_v44 = vstv %s256_s22 }
  0x4b   : > { %v291_v46 = vadd.f32 %v290_v37, %v286_v41  ;;  %v258_v48 = vmul.f32 %v624_v4, %v257_v44  ;;  %v262_v55 = vstv %s662_s24 }
  0x4c   : > { %v254_v47 = vadd.f32 %v253_v43, %v249_v42  ;;  %v294_v49 = vstv %s293_s27 }
  0x4d   : > { %v298_v50 = vstv %s297_s28  ;;  %v309_v51 = vmul.f32 %v425_v21, %v291_v46  ;;  %v295_v53 = vmul.f32 %v294_v49, %v618_v2 }
  0x4e   : > { %v259_v52 = vadd.f32 %v258_v48, %v254_v47  ;;  %v299_v54 = vmul.f32 %v621_v3, %v298_v50  ;;  %v303_v56 = vstv %s302_s4 }
  0x4f   : > { %v310_v57 = vadd.f32 %v309_v51, %v245_v45  ;;  %v304_v59 = vmul.f32 %v624_v4, %v303_v56 }
  0x50   : > { %v300_v58 = vadd.f32 %v299_v54, %v295_v53  ;;  %v263_v60 = vadd.f32 %v262_v55, %v259_v52 }
  0x51   : > { %427 = vst [vmem:[%s606_s11 + $0x8] sm:$0xff] %v310_v57 }
  0x52   : > { %v305_v61 = vadd.f32 %v304_v59, %v300_v58 }
  0x54   : > { %v313_v62 = vmul.f32 %v425_v21, %v305_v61 }
  0x56   : > { %v314_v63 = vadd.f32 %v313_v62, %v263_v60 }
  0x58   : > { %428 = vst [vmem:[%s606_s11 + $0x10] sm:$0xff] %v314_v63 }
  0x59 PF: > { %s20_s19 = sadd.s32 1, %s524_s19   ;;  %s700_s17 = smov %s520_s18 }
  0x5a   : > { %p17_p8 = scmp.ge.s32.totalorder %s20_s19, 6   ;;  %s701_s18 = smov %s703_s20 }
  0x5c   :  { %19 = sbr.rel (!%p17_p8) target bundleno = 17 (0x11), region = 68 }
  0x63   :  { %344 = vsyncpa [#allocation5], 1 }
  0x64   :  { %346 = vsyncpa [#allocation5 + $0x1], 1 }

</bundles_post_ra>
